<compile_context>
chip_gen: v6e
topology: v6e:2x2x1
jax: 0.10.0
libtpu: 0.0.40
codegen_flags: <defaults>
</compile_context>

<pallas_src>
import functools
from math import sqrt

import jax
import jax.numpy as jnp
from jax import lax
from jax.experimental import pallas as pl
from jax.experimental.pallas import tpu as pltpu


def _flash_attn_kernel(q_ref, k_ref, v_ref, o_ref, m_ref, l_ref, acc_ref, *,
                       scale, num_heads, e_dim, d_dim, kc):
    # q_ref: (tq, H*E)  k_ref: (tk, H*E)  v_ref: (tk, H*D)  o_ref: (tq, H*D)
    # m_ref / l_ref: (H, tq, 1) f32 running max / running sum
    # acc_ref: (tq, H*D) f32 unnormalized output accumulator
    H, E, D = num_heads, e_dim, d_dim
    tq = q_ref.shape[0]
    tk = k_ref.shape[0]
    n_chunks = tk // kc
    sk = pl.program_id(2)

    @pl.when(sk == 0)
    def _init():
        m_ref[...] = jnp.full(m_ref.shape, -jnp.inf, dtype=m_ref.dtype)
        l_ref[...] = jnp.zeros(l_ref.shape, dtype=l_ref.dtype)
        acc_ref[...] = jnp.zeros(acc_ref.shape, dtype=acc_ref.dtype)

    # Scale folded into Q (tq*E multiplies instead of tq*tk), then cast to
    # bf16 once per grid step so both MXU operands are narrow.
    q_heads = [
        (q_ref[:, h * E:(h + 1) * E] * scale).astype(jnp.bfloat16)
        for h in range(H)
    ]

    # Static (fully unrolled) loop over kc-wide sub-chunks of the K/V block:
    # the grid step amortizes its fixed cost over the whole tk-wide block
    # while the (tq, kc) f32 probability tile stays register-resident.
    for c in range(n_chunks):
        c0 = c * kc

        alpha_parts = []
        pv_parts = []
        for h in range(H):
            e0, d0 = h * E, h * D
            q_h = q_heads[h]                                        # (tq, E)
            k_h = k_ref[c0:c0 + kc, e0:e0 + E].astype(jnp.bfloat16)  # (kc, E)
            v_h = v_ref[c0:c0 + kc, d0:d0 + D].astype(jnp.bfloat16)  # (kc, D)

            # scores = q @ k^T: contract the trailing E dims directly (no .T),
            # bf16 operands with f32 MXU accumulation.
            s = lax.dot_general(q_h, k_h, (((1,), (1,)), ((), ())),
                                preferred_element_type=jnp.float32)  # (tq, kc)

            m_prev = m_ref[h]                                        # (tq, 1)
            m_new = jnp.maximum(m_prev, jnp.max(s, axis=-1, keepdims=True))
            alpha = jnp.exp(m_prev - m_new)                          # (tq, 1)
            p = jnp.exp(s - m_new)                                   # (tq, kc)

            l_ref[h] = alpha * l_ref[h] + jnp.sum(p, axis=-1, keepdims=True)
            m_ref[h] = m_new

            pv = jnp.dot(p.astype(jnp.bfloat16), v_h,
                         preferred_element_type=jnp.float32)         # (tq, D)
            alpha_parts.append(jnp.broadcast_to(alpha, (tq, D)))
            pv_parts.append(pv)

        # One lane-dense (tq, H*D) read-modify-write per chunk instead of H
        # masked 32-lane partial stores.
        alpha_full = jnp.concatenate(alpha_parts, axis=-1)           # (tq, H*D)
        pv_full = jnp.concatenate(pv_parts, axis=-1)                 # (tq, H*D)
        acc_ref[...] = alpha_full * acc_ref[...] + pv_full

    @pl.when(sk == pl.num_programs(2) - 1)
    def _finalize():
        # Exact reciprocal/divide (epilogue runs once per output block) fused
        # into a single full-width normalize + single lane-dense output store.
        l_parts = [jnp.broadcast_to(l_ref[h], (tq, D)) for h in range(H)]
        l_full = jnp.concatenate(l_parts, axis=-1)                   # (tq, H*D)
        o_ref[...] = (acc_ref[...] / l_full).astype(o_ref.dtype)


def _pick_tile(dim, candidates):
    for c in candidates:
        if c <= dim and dim % c == 0:
            return c
    return dim  # fall back to a single full-dim block


def full_attention(queries, keys, values, scale=None):
    """queries: (B, L, H, E), keys: (B, S, H, E), values: (B, S, H, D)
       returns V: (B, L, H, D)  (mask_flag=False, attn_mask=None, eval mode)."""
    B, L, H, E = queries.shape
    _, S, _, D = values.shape
    scale = scale if scale is not None else 1.0 / sqrt(E)

    # Free reshapes (merge trailing contiguous dims) — no HBM transpose.
    qf = queries.reshape(B, L, H * E)
    kf = keys.reshape(B, S, H * E)
    vf = values.reshape(B, S, H * D)

    # Larger tiles: 256 query rows and up to 512 K/V rows per grid step.
    tq = _pick_tile(L, (256, 128, 64, 32, 16, 8))
    tk = _pick_tile(S, (512, 256, 128, 64, 32, 16, 8))

    # Keep the parallel grid extent (B * L_tiles) >= 2 so both v7x TensorCores
    # get work even for tiny batch sizes.
    while B * (L // tq) < 2 and tq > 8 and tq % 2 == 0 and L % (tq // 2) == 0:
        tq //= 2

    # Inner K/V chunk width: cap the (tq, kc) f32 probability tile at ~32
    # vregs (128 KiB) so it stays register-resident.
    if tq * tk * 4 <= 128 * 1024:
        kc = tk
    else:
        kc = 128
        while tk % kc != 0 and kc > 8:
            kc //= 2

    grid = (B, L // tq, S // tk)

    kernel = functools.partial(_flash_attn_kernel, scale=scale, num_heads=H,
                               e_dim=E, d_dim=D, kc=kc)

    out = pl.pallas_call(
        kernel,
        out_shape=jax.ShapeDtypeStruct((B, L, H * D), queries.dtype),
        grid_spec=pltpu.PrefetchScalarGridSpec(
            num_scalar_prefetch=0,
            grid=grid,
            in_specs=[
                pl.BlockSpec((None, tq, H * E), lambda b, lq, sk: (b, lq, 0)),
                pl.BlockSpec((None, tk, H * E), lambda b, lq, sk: (b, sk, 0)),
                pl.BlockSpec((None, tk, H * D), lambda b, lq, sk: (b, sk, 0)),
            ],
            out_specs=pl.BlockSpec((None, tq, H * D),
                                   lambda b, lq, sk: (b, lq, 0)),
            scratch_shapes=[
                pltpu.VMEM((H, tq, 1), jnp.float32),    # running max m
                pltpu.VMEM((H, tq, 1), jnp.float32),    # running sum l
                pltpu.VMEM((tq, H * D), jnp.float32),   # output accumulator
            ],
        ),
        compiler_params=pltpu.CompilerParams(
            # B and L-tiles parallel (2-TC sharding on v7x); S reduction last.
            dimension_semantics=("parallel", "parallel", "arbitrary"),
            # Headroom above the scoped default, below v7x's 64 MiB physical.
            vmem_limit_bytes=48 * 1024 * 1024,
        ),
    )(qf, kf, vf)

    # Free reshape back to the PyTorch output layout.
    return out.reshape(B, L, H, D)


def _reference(queries, keys, values, scale=None):
    B, L, H, E = queries.shape
    scale = scale if scale is not None else 1.0 / sqrt(E)
    scores = jnp.einsum('blhe,bshe->bhls', queries, keys)
    a = jax.nn.softmax(scale * scores, axis=-1)
    a = jnp.nan_to_num(a)
    return jnp.einsum('bhls,bshd->blhd', a, values)


def _run_case(B, L, S, H, E, D, seed):
    key = jax.random.PRNGKey(seed)
    kq, kk, kv = jax.random.split(key, 3)
    queries = jax.random.normal(kq, (B, L, H, E), dtype=jnp.float32)
    keys = jax.random.normal(kk, (B, S, H, E), dtype=jnp.float32)
    values = jax.random.normal(kv, (B, S, H, D), dtype=jnp.float32)

    out = jax.block_until_ready(full_attention(queries, keys, values))
    ref = _reference(queries, keys, values)

    assert out.shape == (B, L, H, D)
    # Tolerance covers the bf16 MXU operands (f32 accumulation; normalization
    # itself is exact).
    assert jnp.allclose(out, ref, atol=2e-2, rtol=2e-2), \
        float(jnp.max(jnp.abs(out - ref)))


if __name__ == "__main__":
    # Small shape matching the module's toy config (single tiny block).
    _run_case(B=2, L=8, S=8, H=4, E=32, D=32, seed=0)
    # Multiple S grid steps (online-softmax carry) + inner K/V chunking.
    _run_case(B=2, L=256, S=768, H=4, E=32, D=32, seed=1)
    # Full tk=512 K/V block (4 inner chunks) and multiple L tiles.
    _run_case(B=2, L=512, S=512, H=4, E=32, D=32, seed=2)
    print("KERNEL_OK")
</pallas_src>

<mosaic_0001>
module attributes {stable_mosaic.version = 11 : i64} {
  func.func @_flash_attn_kernel(%arg0: i32, %arg1: i32, %arg2: i32, %arg3: memref<1x8x128xf32, #tpu.memory_space<vmem>>, %arg4: memref<1x8x128xf32, #tpu.memory_space<vmem>>, %arg5: memref<1x8x128xf32, #tpu.memory_space<vmem>>, %arg6: memref<1x8x128xf32, #tpu.memory_space<vmem>>, %arg7: memref<4x8x1xf32, #tpu.memory_space<vmem>>, %arg8: memref<4x8x1xf32, #tpu.memory_space<vmem>>, %arg9: memref<8x128xf32, #tpu.memory_space<vmem>>) attributes {dimension_semantics = [#tpu.dimension_semantics<parallel>, #tpu.dimension_semantics<parallel>, #tpu.dimension_semantics<arbitrary>], iteration_bounds = array<i64: 2, 1, 1>, scalar_prefetch = 0 : i64, scratch_operands = 3 : i64, tpu.core_type = #tpu.core_type<tc>, window_params = [{transform_indices = @transform_0, window_bounds = array<i64: 1, 8, 128>}, {transform_indices = @transform_1, window_bounds = array<i64: 1, 8, 128>}, {transform_indices = @transform_2, window_bounds = array<i64: 1, 8, 128>}, {transform_indices = @transform_3, window_bounds = array<i64: 1, 8, 128>}]} {
    %c0_i32 = arith.constant 0 : i32
    %0 = arith.cmpi eq, %arg2, %c0_i32 : i32
    %1 = arith.extui %0 : i1 to i32
    %c0_i32_0 = arith.constant 0 : i32
    %2 = arith.cmpi ne, %1, %c0_i32_0 : i32
    scf.if %2 {
      %cst_103 = arith.constant 0xFF800000 : f32
      %164 = vector.broadcast %cst_103 : f32 to vector<4x8x1xf32>
      %c0_104 = arith.constant 0 : index
      %c0_105 = arith.constant 0 : index
      %c0_106 = arith.constant 0 : index
      %165 = vector.load %arg7[%c0_104, %c0_105, %c0_106] : memref<4x8x1xf32, #tpu.memory_space<vmem>>, vector<4x8x1xf32>
      tpu.vector_store %arg7[%c0_104, %c0_105, %c0_106], %164 {strides = array<i32>} : memref<4x8x1xf32, #tpu.memory_space<vmem>>, vector<4x8x1xf32>,
      %cst_107 = arith.constant 0.000000e+00 : f32
      %166 = vector.broadcast %cst_107 : f32 to vector<4x8x1xf32>
      %c0_108 = arith.constant 0 : index
      %c0_109 = arith.constant 0 : index
      %c0_110 = arith.constant 0 : index
      %167 = vector.load %arg8[%c0_108, %c0_109, %c0_110] : memref<4x8x1xf32, #tpu.memory_space<vmem>>, vector<4x8x1xf32>
      tpu.vector_store %arg8[%c0_108, %c0_109, %c0_110], %166 {strides = array<i32>} : memref<4x8x1xf32, #tpu.memory_space<vmem>>, vector<4x8x1xf32>,
      %cst_111 = arith.constant 0.000000e+00 : f32
      %168 = vector.broadcast %cst_111 : f32 to vector<8x128xf32>
      %c0_112 = arith.constant 0 : index
      %c0_113 = arith.constant 0 : index
      %169 = vector.load %arg9[%c0_112, %c0_113] : memref<8x128xf32, #tpu.memory_space<vmem>>, vector<8x128xf32>
      tpu.vector_store %arg9[%c0_112, %c0_113], %168 {strides = array<i32>} : memref<8x128xf32, #tpu.memory_space<vmem>>, vector<8x128xf32>,
    } else {
    }
    %c0 = arith.constant 0 : index
    %c0_1 = arith.constant 0 : index
    %c0_2 = arith.constant 0 : index
    %3 = vector.load %arg3[%c0, %c0_1, %c0_2] : memref<1x8x128xf32, #tpu.memory_space<vmem>>, vector<1x8x32xf32>
    %4 = vector.shape_cast %3 : vector<1x8x32xf32> to vector<8x32xf32>
    %cst = arith.constant 0.176776692 : f32
    %5 = vector.broadcast %cst : f32 to vector<8x32xf32>
    %6 = arith.mulf %4, %5 : vector<8x32xf32>
    %7 = arith.truncf %6 : vector<8x32xf32> to vector<8x32xbf16>
    %c0_3 = arith.constant 0 : index
    %c0_4 = arith.constant 0 : index
    %c32 = arith.constant 32 : index
    %8 = vector.load %arg3[%c0_3, %c0_4, %c32] : memref<1x8x128xf32, #tpu.memory_space<vmem>>, vector<1x8x32xf32>
    %9 = vector.shape_cast %8 : vector<1x8x32xf32> to vector<8x32xf32>
    %cst_5 = arith.constant 0.176776692 : f32
    %10 = vector.broadcast %cst_5 : f32 to vector<8x32xf32>
    %11 = arith.mulf %9, %10 : vector<8x32xf32>
    %12 = arith.truncf %11 : vector<8x32xf32> to vector<8x32xbf16>
    %c0_6 = arith.constant 0 : index
    %c0_7 = arith.constant 0 : index
    %c64 = arith.constant 64 : index
    %13 = vector.load %arg3[%c0_6, %c0_7, %c64] : memref<1x8x128xf32, #tpu.memory_space<vmem>>, vector<1x8x32xf32>
    %14 = vector.shape_cast %13 : vector<1x8x32xf32> to vector<8x32xf32>
    %cst_8 = arith.constant 0.176776692 : f32
    %15 = vector.broadcast %cst_8 : f32 to vector<8x32xf32>
    %16 = arith.mulf %14, %15 : vector<8x32xf32>
    %17 = arith.truncf %16 : vector<8x32xf32> to vector<8x32xbf16>
    %c0_9 = arith.constant 0 : index
    %c0_10 = arith.constant 0 : index
    %c96 = arith.constant 96 : index
    %18 = vector.load %arg3[%c0_9, %c0_10, %c96] : memref<1x8x128xf32, #tpu.memory_space<vmem>>, vector<1x8x32xf32>
    %19 = vector.shape_cast %18 : vector<1x8x32xf32> to vector<8x32xf32>
    %cst_11 = arith.constant 0.176776692 : f32
    %20 = vector.broadcast %cst_11 : f32 to vector<8x32xf32>
    %21 = arith.mulf %19, %20 : vector<8x32xf32>
    %22 = arith.truncf %21 : vector<8x32xf32> to vector<8x32xbf16>
    %c0_12 = arith.constant 0 : index
    %c0_13 = arith.constant 0 : index
    %c0_14 = arith.constant 0 : index
    %23 = vector.load %arg4[%c0_12, %c0_13, %c0_14] : memref<1x8x128xf32, #tpu.memory_space<vmem>>, vector<1x8x32xf32>
    %24 = vector.shape_cast %23 : vector<1x8x32xf32> to vector<8x32xf32>
    %25 = arith.truncf %24 : vector<8x32xf32> to vector<8x32xbf16>
    %c0_15 = arith.constant 0 : index
    %c0_16 = arith.constant 0 : index
    %c0_17 = arith.constant 0 : index
    %26 = vector.load %arg5[%c0_15, %c0_16, %c0_17] : memref<1x8x128xf32, #tpu.memory_space<vmem>>, vector<1x8x32xf32>
    %27 = vector.shape_cast %26 : vector<1x8x32xf32> to vector<8x32xf32>
    %28 = arith.truncf %27 : vector<8x32xf32> to vector<8x32xbf16>
    %cst_18 = arith.constant dense<0.000000e+00> : vector<8x8xf32>
    %29 = tpu.matmul %7, %25, %cst_18 {dimension_numbers = #tpu.dot_dimension_numbers<[1], [1], [0], [0], [0, 0, 1, 0], [], []>} : vector<8x32xbf16>, vector<8x32xbf16>, vector<8x8xf32> -> vector<8x8xf32>
    %c0_19 = arith.constant 0 : index
    %c0_20 = arith.constant 0 : index
    %c0_21 = arith.constant 0 : index
    %30 = vector.load %arg7[%c0_19, %c0_20, %c0_21] : memref<4x8x1xf32, #tpu.memory_space<vmem>>, vector<1x8x1xf32>
    %31 = vector.shape_cast %30 : vector<1x8x1xf32> to vector<8x1xf32>
    %cst_22 = arith.constant dense<0xFF800000> : vector<8xf32>
    %32 = vector.multi_reduction <maximumf>, %29, %cst_22 [1] : vector<8x8xf32> to vector<8xf32>
    %33 = vector.shape_cast %32 : vector<8xf32> to vector<8x1xf32>
    %34 = arith.maximumf %31, %33 : vector<8x1xf32>
    %35 = arith.subf %31, %34 : vector<8x1xf32>
    %36 = math.exp %35 : vector<8x1xf32>
    %37 = vector.broadcast %34 : vector<8x1xf32> to vector<8x8xf32>
    %38 = arith.subf %29, %37 : vector<8x8xf32>
    %39 = math.exp %38 : vector<8x8xf32>
    %c0_23 = arith.constant 0 : index
    %c0_24 = arith.constant 0 : index
    %c0_25 = arith.constant 0 : index
    %40 = vector.load %arg8[%c0_23, %c0_24, %c0_25] : memref<4x8x1xf32, #tpu.memory_space<vmem>>, vector<1x8x1xf32>
    %41 = vector.shape_cast %40 : vector<1x8x1xf32> to vector<8x1xf32>
    %42 = arith.mulf %36, %41 : vector<8x1xf32>
    %cst_26 = arith.constant dense<0.000000e+00> : vector<8xf32>
    %43 = vector.multi_reduction <add>, %39, %cst_26 [1] : vector<8x8xf32> to vector<8xf32>
    %44 = vector.shape_cast %43 : vector<8xf32> to vector<8x1xf32>
    %45 = arith.addf %42, %44 : vector<8x1xf32>
    %c0_27 = arith.constant 0 : index
    %c0_28 = arith.constant 0 : index
    %c0_29 = arith.constant 0 : index
    %46 = vector.load %arg8[%c0_27, %c0_28, %c0_29] : memref<4x8x1xf32, #tpu.memory_space<vmem>>, vector<1x8x1xf32>
    %47 = vector.shape_cast %46 : vector<1x8x1xf32> to vector<8x1xf32>
    %48 = vector.shape_cast %45 : vector<8x1xf32> to vector<1x8x1xf32>
    tpu.vector_store %arg8[%c0_27, %c0_28, %c0_29], %48 {strides = array<i32>} : memref<4x8x1xf32, #tpu.memory_space<vmem>>, vector<1x8x1xf32>,
    %c0_30 = arith.constant 0 : index
    %c0_31 = arith.constant 0 : index
    %c0_32 = arith.constant 0 : index
    %49 = vector.load %arg7[%c0_30, %c0_31, %c0_32] : memref<4x8x1xf32, #tpu.memory_space<vmem>>, vector<1x8x1xf32>
    %50 = vector.shape_cast %49 : vector<1x8x1xf32> to vector<8x1xf32>
    %51 = vector.shape_cast %34 : vector<8x1xf32> to vector<1x8x1xf32>
    tpu.vector_store %arg7[%c0_30, %c0_31, %c0_32], %51 {strides = array<i32>} : memref<4x8x1xf32, #tpu.memory_space<vmem>>, vector<1x8x1xf32>,
    %52 = arith.truncf %39 : vector<8x8xf32> to vector<8x8xbf16>
    %cst_33 = arith.constant dense<0.000000e+00> : vector<8x32xf32>
    %53 = tpu.matmul %52, %28, %cst_33 {dimension_numbers = #tpu.dot_dimension_numbers<[1], [0], [0], [1], [0, 0, 1, 1], [], []>} : vector<8x8xbf16>, vector<8x32xbf16>, vector<8x32xf32> -> vector<8x32xf32>
    %54 = vector.shape_cast %36 : vector<8x1xf32> to vector<8x1xf32>
    %55 = vector.broadcast %54 : vector<8x1xf32> to vector<8x32xf32>
    %c0_34 = arith.constant 0 : index
    %c0_35 = arith.constant 0 : index
    %c32_36 = arith.constant 32 : index
    %56 = vector.load %arg4[%c0_34, %c0_35, %c32_36] : memref<1x8x128xf32, #tpu.memory_space<vmem>>, vector<1x8x32xf32>
    %57 = vector.shape_cast %56 : vector<1x8x32xf32> to vector<8x32xf32>
    %58 = arith.truncf %57 : vector<8x32xf32> to vector<8x32xbf16>
    %c0_37 = arith.constant 0 : index
    %c0_38 = arith.constant 0 : index
    %c32_39 = arith.constant 32 : index
    %59 = vector.load %arg5[%c0_37, %c0_38, %c32_39] : memref<1x8x128xf32, #tpu.memory_space<vmem>>, vector<1x8x32xf32>
    %60 = vector.shape_cast %59 : vector<1x8x32xf32> to vector<8x32xf32>
    %61 = arith.truncf %60 : vector<8x32xf32> to vector<8x32xbf16>
    %cst_40 = arith.constant dense<0.000000e+00> : vector<8x8xf32>
    %62 = tpu.matmul %12, %58, %cst_40 {dimension_numbers = #tpu.dot_dimension_numbers<[1], [1], [0], [0], [0, 0, 1, 0], [], []>} : vector<8x32xbf16>, vector<8x32xbf16>, vector<8x8xf32> -> vector<8x8xf32>
    %c1 = arith.constant 1 : index
    %c0_41 = arith.constant 0 : index
    %c0_42 = arith.constant 0 : index
    %63 = vector.load %arg7[%c1, %c0_41, %c0_42] : memref<4x8x1xf32, #tpu.memory_space<vmem>>, vector<1x8x1xf32>
    %64 = vector.shape_cast %63 : vector<1x8x1xf32> to vector<8x1xf32>
    %cst_43 = arith.constant dense<0xFF800000> : vector<8xf32>
    %65 = vector.multi_reduction <maximumf>, %62, %cst_43 [1] : vector<8x8xf32> to vector<8xf32>
    %66 = vector.shape_cast %65 : vector<8xf32> to vector<8x1xf32>
    %67 = arith.maximumf %64, %66 : vector<8x1xf32>
    %68 = arith.subf %64, %67 : vector<8x1xf32>
    %69 = math.exp %68 : vector<8x1xf32>
    %70 = vector.broadcast %67 : vector<8x1xf32> to vector<8x8xf32>
    %71 = arith.subf %62, %70 : vector<8x8xf32>
    %72 = math.exp %71 : vector<8x8xf32>
    %c1_44 = arith.constant 1 : index
    %c0_45 = arith.constant 0 : index
    %c0_46 = arith.constant 0 : index
    %73 = vector.load %arg8[%c1_44, %c0_45, %c0_46] : memref<4x8x1xf32, #tpu.memory_space<vmem>>, vector<1x8x1xf32>
    %74 = vector.shape_cast %73 : vector<1x8x1xf32> to vector<8x1xf32>
    %75 = arith.mulf %69, %74 : vector<8x1xf32>
    %cst_47 = arith.constant dense<0.000000e+00> : vector<8xf32>
    %76 = vector.multi_reduction <add>, %72, %cst_47 [1] : vector<8x8xf32> to vector<8xf32>
    %77 = vector.shape_cast %76 : vector<8xf32> to vector<8x1xf32>
    %78 = arith.addf %75, %77 : vector<8x1xf32>
    %c1_48 = arith.constant 1 : index
    %c0_49 = arith.constant 0 : index
    %c0_50 = arith.constant 0 : index
    %79 = vector.load %arg8[%c1_48, %c0_49, %c0_50] : memref<4x8x1xf32, #tpu.memory_space<vmem>>, vector<1x8x1xf32>
    %80 = vector.shape_cast %79 : vector<1x8x1xf32> to vector<8x1xf32>
    %81 = vector.shape_cast %78 : vector<8x1xf32> to vector<1x8x1xf32>
    tpu.vector_store %arg8[%c1_48, %c0_49, %c0_50], %81 {strides = array<i32>} : memref<4x8x1xf32, #tpu.memory_space<vmem>>, vector<1x8x1xf32>,
    %c1_51 = arith.constant 1 : index
    %c0_52 = arith.constant 0 : index
    %c0_53 = arith.constant 0 : index
    %82 = vector.load %arg7[%c1_51, %c0_52, %c0_53] : memref<4x8x1xf32, #tpu.memory_space<vmem>>, vector<1x8x1xf32>
    %83 = vector.shape_cast %82 : vector<1x8x1xf32> to vector<8x1xf32>
    %84 = vector.shape_cast %67 : vector<8x1xf32> to vector<1x8x1xf32>
    tpu.vector_store %arg7[%c1_51, %c0_52, %c0_53], %84 {strides = array<i32>} : memref<4x8x1xf32, #tpu.memory_space<vmem>>, vector<1x8x1xf32>,
    %85 = arith.truncf %72 : vector<8x8xf32> to vector<8x8xbf16>
    %cst_54 = arith.constant dense<0.000000e+00> : vector<8x32xf32>
    %86 = tpu.matmul %85, %61, %cst_54 {dimension_numbers = #tpu.dot_dimension_numbers<[1], [0], [0], [1], [0, 0, 1, 1], [], []>} : vector<8x8xbf16>, vector<8x32xbf16>, vector<8x32xf32> -> vector<8x32xf32>
    %87 = vector.shape_cast %69 : vector<8x1xf32> to vector<8x1xf32>
    %88 = vector.broadcast %87 : vector<8x1xf32> to vector<8x32xf32>
    %c0_55 = arith.constant 0 : index
    %c0_56 = arith.constant 0 : index
    %c64_57 = arith.constant 64 : index
    %89 = vector.load %arg4[%c0_55, %c0_56, %c64_57] : memref<1x8x128xf32, #tpu.memory_space<vmem>>, vector<1x8x32xf32>
    %90 = vector.shape_cast %89 : vector<1x8x32xf32> to vector<8x32xf32>
    %91 = arith.truncf %90 : vector<8x32xf32> to vector<8x32xbf16>
    %c0_58 = arith.constant 0 : index
    %c0_59 = arith.constant 0 : index
    %c64_60 = arith.constant 64 : index
    %92 = vector.load %arg5[%c0_58, %c0_59, %c64_60] : memref<1x8x128xf32, #tpu.memory_space<vmem>>, vector<1x8x32xf32>
    %93 = vector.shape_cast %92 : vector<1x8x32xf32> to vector<8x32xf32>
    %94 = arith.truncf %93 : vector<8x32xf32> to vector<8x32xbf16>
    %cst_61 = arith.constant dense<0.000000e+00> : vector<8x8xf32>
    %95 = tpu.matmul %17, %91, %cst_61 {dimension_numbers = #tpu.dot_dimension_numbers<[1], [1], [0], [0], [0, 0, 1, 0], [], []>} : vector<8x32xbf16>, vector<8x32xbf16>, vector<8x8xf32> -> vector<8x8xf32>
    %c2 = arith.constant 2 : index
    %c0_62 = arith.constant 0 : index
    %c0_63 = arith.constant 0 : index
    %96 = vector.load %arg7[%c2, %c0_62, %c0_63] : memref<4x8x1xf32, #tpu.memory_space<vmem>>, vector<1x8x1xf32>
    %97 = vector.shape_cast %96 : vector<1x8x1xf32> to vector<8x1xf32>
    %cst_64 = arith.constant dense<0xFF800000> : vector<8xf32>
    %98 = vector.multi_reduction <maximumf>, %95, %cst_64 [1] : vector<8x8xf32> to vector<8xf32>
    %99 = vector.shape_cast %98 : vector<8xf32> to vector<8x1xf32>
    %100 = arith.maximumf %97, %99 : vector<8x1xf32>
    %101 = arith.subf %97, %100 : vector<8x1xf32>
    %102 = math.exp %101 : vector<8x1xf32>
    %103 = vector.broadcast %100 : vector<8x1xf32> to vector<8x8xf32>
    %104 = arith.subf %95, %103 : vector<8x8xf32>
    %105 = math.exp %104 : vector<8x8xf32>
    %c2_65 = arith.constant 2 : index
    %c0_66 = arith.constant 0 : index
    %c0_67 = arith.constant 0 : index
    %106 = vector.load %arg8[%c2_65, %c0_66, %c0_67] : memref<4x8x1xf32, #tpu.memory_space<vmem>>, vector<1x8x1xf32>
    %107 = vector.shape_cast %106 : vector<1x8x1xf32> to vector<8x1xf32>
    %108 = arith.mulf %102, %107 : vector<8x1xf32>
    %cst_68 = arith.constant dense<0.000000e+00> : vector<8xf32>
    %109 = vector.multi_reduction <add>, %105, %cst_68 [1] : vector<8x8xf32> to vector<8xf32>
    %110 = vector.shape_cast %109 : vector<8xf32> to vector<8x1xf32>
    %111 = arith.addf %108, %110 : vector<8x1xf32>
    %c2_69 = arith.constant 2 : index
    %c0_70 = arith.constant 0 : index
    %c0_71 = arith.constant 0 : index
    %112 = vector.load %arg8[%c2_69, %c0_70, %c0_71] : memref<4x8x1xf32, #tpu.memory_space<vmem>>, vector<1x8x1xf32>
    %113 = vector.shape_cast %112 : vector<1x8x1xf32> to vector<8x1xf32>
    %114 = vector.shape_cast %111 : vector<8x1xf32> to vector<1x8x1xf32>
    tpu.vector_store %arg8[%c2_69, %c0_70, %c0_71], %114 {strides = array<i32>} : memref<4x8x1xf32, #tpu.memory_space<vmem>>, vector<1x8x1xf32>,
    %c2_72 = arith.constant 2 : index
    %c0_73 = arith.constant 0 : index
    %c0_74 = arith.constant 0 : index
    %115 = vector.load %arg7[%c2_72, %c0_73, %c0_74] : memref<4x8x1xf32, #tpu.memory_space<vmem>>, vector<1x8x1xf32>
    %116 = vector.shape_cast %115 : vector<1x8x1xf32> to vector<8x1xf32>
    %117 = vector.shape_cast %100 : vector<8x1xf32> to vector<1x8x1xf32>
    tpu.vector_store %arg7[%c2_72, %c0_73, %c0_74], %117 {strides = array<i32>} : memref<4x8x1xf32, #tpu.memory_space<vmem>>, vector<1x8x1xf32>,
    %118 = arith.truncf %105 : vector<8x8xf32> to vector<8x8xbf16>
    %cst_75 = arith.constant dense<0.000000e+00> : vector<8x32xf32>
    %119 = tpu.matmul %118, %94, %cst_75 {dimension_numbers = #tpu.dot_dimension_numbers<[1], [0], [0], [1], [0, 0, 1, 1], [], []>} : vector<8x8xbf16>, vector<8x32xbf16>, vector<8x32xf32> -> vector<8x32xf32>
    %120 = vector.shape_cast %102 : vector<8x1xf32> to vector<8x1xf32>
    %121 = vector.broadcast %120 : vector<8x1xf32> to vector<8x32xf32>
    %c0_76 = arith.constant 0 : index
    %c0_77 = arith.constant 0 : index
    %c96_78 = arith.constant 96 : index
    %122 = vector.load %arg4[%c0_76, %c0_77, %c96_78] : memref<1x8x128xf32, #tpu.memory_space<vmem>>, vector<1x8x32xf32>
    %123 = vector.shape_cast %122 : vector<1x8x32xf32> to vector<8x32xf32>
    %124 = arith.truncf %123 : vector<8x32xf32> to vector<8x32xbf16>
    %c0_79 = arith.constant 0 : index
    %c0_80 = arith.constant 0 : index
    %c96_81 = arith.constant 96 : index
    %125 = vector.load %arg5[%c0_79, %c0_80, %c96_81] : memref<1x8x128xf32, #tpu.memory_space<vmem>>, vector<1x8x32xf32>
    %126 = vector.shape_cast %125 : vector<1x8x32xf32> to vector<8x32xf32>
    %127 = arith.truncf %126 : vector<8x32xf32> to vector<8x32xbf16>
    %cst_82 = arith.constant dense<0.000000e+00> : vector<8x8xf32>
    %128 = tpu.matmul %22, %124, %cst_82 {dimension_numbers = #tpu.dot_dimension_numbers<[1], [1], [0], [0], [0, 0, 1, 0], [], []>} : vector<8x32xbf16>, vector<8x32xbf16>, vector<8x8xf32> -> vector<8x8xf32>
    %c3 = arith.constant 3 : index
    %c0_83 = arith.constant 0 : index
    %c0_84 = arith.constant 0 : index
    %129 = vector.load %arg7[%c3, %c0_83, %c0_84] : memref<4x8x1xf32, #tpu.memory_space<vmem>>, vector<1x8x1xf32>
    %130 = vector.shape_cast %129 : vector<1x8x1xf32> to vector<8x1xf32>
    %cst_85 = arith.constant dense<0xFF800000> : vector<8xf32>
    %131 = vector.multi_reduction <maximumf>, %128, %cst_85 [1] : vector<8x8xf32> to vector<8xf32>
    %132 = vector.shape_cast %131 : vector<8xf32> to vector<8x1xf32>
    %133 = arith.maximumf %130, %132 : vector<8x1xf32>
    %134 = arith.subf %130, %133 : vector<8x1xf32>
    %135 = math.exp %134 : vector<8x1xf32>
    %136 = vector.broadcast %133 : vector<8x1xf32> to vector<8x8xf32>
    %137 = arith.subf %128, %136 : vector<8x8xf32>
    %138 = math.exp %137 : vector<8x8xf32>
    %c3_86 = arith.constant 3 : index
    %c0_87 = arith.constant 0 : index
    %c0_88 = arith.constant 0 : index
    %139 = vector.load %arg8[%c3_86, %c0_87, %c0_88] : memref<4x8x1xf32, #tpu.memory_space<vmem>>, vector<1x8x1xf32>
    %140 = vector.shape_cast %139 : vector<1x8x1xf32> to vector<8x1xf32>
    %141 = arith.mulf %135, %140 : vector<8x1xf32>
    %cst_89 = arith.constant dense<0.000000e+00> : vector<8xf32>
    %142 = vector.multi_reduction <add>, %138, %cst_89 [1] : vector<8x8xf32> to vector<8xf32>
    %143 = vector.shape_cast %142 : vector<8xf32> to vector<8x1xf32>
    %144 = arith.addf %141, %143 : vector<8x1xf32>
    %c3_90 = arith.constant 3 : index
    %c0_91 = arith.constant 0 : index
    %c0_92 = arith.constant 0 : index
    %145 = vector.load %arg8[%c3_90, %c0_91, %c0_92] : memref<4x8x1xf32, #tpu.memory_space<vmem>>, vector<1x8x1xf32>
    %146 = vector.shape_cast %145 : vector<1x8x1xf32> to vector<8x1xf32>
    %147 = vector.shape_cast %144 : vector<8x1xf32> to vector<1x8x1xf32>
    tpu.vector_store %arg8[%c3_90, %c0_91, %c0_92], %147 {strides = array<i32>} : memref<4x8x1xf32, #tpu.memory_space<vmem>>, vector<1x8x1xf32>,
    %c3_93 = arith.constant 3 : index
    %c0_94 = arith.constant 0 : index
    %c0_95 = arith.constant 0 : index
    %148 = vector.load %arg7[%c3_93, %c0_94, %c0_95] : memref<4x8x1xf32, #tpu.memory_space<vmem>>, vector<1x8x1xf32>
    %149 = vector.shape_cast %148 : vector<1x8x1xf32> to vector<8x1xf32>
    %150 = vector.shape_cast %133 : vector<8x1xf32> to vector<1x8x1xf32>
    tpu.vector_store %arg7[%c3_93, %c0_94, %c0_95], %150 {strides = array<i32>} : memref<4x8x1xf32, #tpu.memory_space<vmem>>, vector<1x8x1xf32>,
    %151 = arith.truncf %138 : vector<8x8xf32> to vector<8x8xbf16>
    %cst_96 = arith.constant dense<0.000000e+00> : vector<8x32xf32>
    %152 = tpu.matmul %151, %127, %cst_96 {dimension_numbers = #tpu.dot_dimension_numbers<[1], [0], [0], [1], [0, 0, 1, 1], [], []>} : vector<8x8xbf16>, vector<8x32xbf16>, vector<8x32xf32> -> vector<8x32xf32>
    %153 = vector.shape_cast %135 : vector<8x1xf32> to vector<8x1xf32>
    %154 = vector.broadcast %153 : vector<8x1xf32> to vector<8x32xf32>
    %155 = tpu.concatenate %55, %88, %121, %154 in 1 : vector<8x32xf32>, vector<8x32xf32>, vector<8x32xf32>, vector<8x32xf32> -> vector<8x128xf32>
    %156 = tpu.concatenate %53, %86, %119, %152 in 1 : vector<8x32xf32>, vector<8x32xf32>, vector<8x32xf32>, vector<8x32xf32> -> vector<8x128xf32>
    %c0_97 = arith.constant 0 : index
    %c0_98 = arith.constant 0 : index
    %157 = vector.load %arg9[%c0_97, %c0_98] : memref<8x128xf32, #tpu.memory_space<vmem>>, vector<8x128xf32>
    %158 = arith.mulf %155, %157 : vector<8x128xf32>
    %159 = arith.addf %158, %156 : vector<8x128xf32>
    %c0_99 = arith.constant 0 : index
    %c0_100 = arith.constant 0 : index
    %160 = vector.load %arg9[%c0_99, %c0_100] : memref<8x128xf32, #tpu.memory_space<vmem>>, vector<8x128xf32>
    tpu.vector_store %arg9[%c0_99, %c0_100], %159 {strides = array<i32>} : memref<8x128xf32, #tpu.memory_space<vmem>>, vector<8x128xf32>,
    %c0_i32_101 = arith.constant 0 : i32
    %161 = arith.cmpi eq, %arg2, %c0_i32_101 : i32
    %162 = arith.extui %161 : i1 to i32
    %c0_i32_102 = arith.constant 0 : i32
    %163 = arith.cmpi ne, %162, %c0_i32_102 : i32
    scf.if %163 {
      %c0_103 = arith.constant 0 : index
      %c0_104 = arith.constant 0 : index
      %c0_105 = arith.constant 0 : index
      %164 = vector.load %arg8[%c0_103, %c0_104, %c0_105] : memref<4x8x1xf32, #tpu.memory_space<vmem>>, vector<1x8x1xf32>
      %165 = vector.shape_cast %164 : vector<1x8x1xf32> to vector<8x1xf32>
      %166 = vector.shape_cast %165 : vector<8x1xf32> to vector<8x1xf32>
      %167 = vector.broadcast %166 : vector<8x1xf32> to vector<8x32xf32>
      %c1_106 = arith.constant 1 : index
      %c0_107 = arith.constant 0 : index
      %c0_108 = arith.constant 0 : index
      %168 = vector.load %arg8[%c1_106, %c0_107, %c0_108] : memref<4x8x1xf32, #tpu.memory_space<vmem>>, vector<1x8x1xf32>
      %169 = vector.shape_cast %168 : vector<1x8x1xf32> to vector<8x1xf32>
      %170 = vector.shape_cast %169 : vector<8x1xf32> to vector<8x1xf32>
      %171 = vector.broadcast %170 : vector<8x1xf32> to vector<8x32xf32>
      %c2_109 = arith.constant 2 : index
      %c0_110 = arith.constant 0 : index
      %c0_111 = arith.constant 0 : index
      %172 = vector.load %arg8[%c2_109, %c0_110, %c0_111] : memref<4x8x1xf32, #tpu.memory_space<vmem>>, vector<1x8x1xf32>
      %173 = vector.shape_cast %172 : vector<1x8x1xf32> to vector<8x1xf32>
      %174 = vector.shape_cast %173 : vector<8x1xf32> to vector<8x1xf32>
      %175 = vector.broadcast %174 : vector<8x1xf32> to vector<8x32xf32>
      %c3_112 = arith.constant 3 : index
      %c0_113 = arith.constant 0 : index
      %c0_114 = arith.constant 0 : index
      %176 = vector.load %arg8[%c3_112, %c0_113, %c0_114] : memref<4x8x1xf32, #tpu.memory_space<vmem>>, vector<1x8x1xf32>
      %177 = vector.shape_cast %176 : vector<1x8x1xf32> to vector<8x1xf32>
      %178 = vector.shape_cast %177 : vector<8x1xf32> to vector<8x1xf32>
      %179 = vector.broadcast %178 : vector<8x1xf32> to vector<8x32xf32>
      %180 = tpu.concatenate %167, %171, %175, %179 in 1 : vector<8x32xf32>, vector<8x32xf32>, vector<8x32xf32>, vector<8x32xf32> -> vector<8x128xf32>
      %c0_115 = arith.constant 0 : index
      %c0_116 = arith.constant 0 : index
      %181 = vector.load %arg9[%c0_115, %c0_116] : memref<8x128xf32, #tpu.memory_space<vmem>>, vector<8x128xf32>
      %182 = arith.divf %181, %180 : vector<8x128xf32>
      %c0_117 = arith.constant 0 : index
      %c0_118 = arith.constant 0 : index
      %c0_119 = arith.constant 0 : index
      %183 = vector.load %arg6[%c0_117, %c0_118, %c0_119] : memref<1x8x128xf32, #tpu.memory_space<vmem>>, vector<1x8x128xf32>
      %184 = vector.shape_cast %183 : vector<1x8x128xf32> to vector<8x128xf32>
      %185 = vector.shape_cast %182 : vector<8x128xf32> to vector<1x8x128xf32>
      tpu.vector_store %arg6[%c0_117, %c0_118, %c0_119], %185 {strides = array<i32>} : memref<1x8x128xf32, #tpu.memory_space<vmem>>, vector<1x8x128xf32>,
    } else {
    }
    return
  }
  func.func @transform_0(%arg0: i32, %arg1: i32, %arg2: i32) -> (i32, i32, i32) {
    %c0_i32 = arith.constant 0 : i32
    %c0_i32_0 = arith.constant 0 : i32
    return %arg0, %arg1, %c0_i32 : i32, i32, i32
  }
  func.func @transform_1(%arg0: i32, %arg1: i32, %arg2: i32) -> (i32, i32, i32) {
    %c0_i32 = arith.constant 0 : i32
    %c0_i32_0 = arith.constant 0 : i32
    return %arg0, %arg2, %c0_i32 : i32, i32, i32
  }
  func.func @transform_2(%arg0: i32, %arg1: i32, %arg2: i32) -> (i32, i32, i32) {
    %c0_i32 = arith.constant 0 : i32
    %c0_i32_0 = arith.constant 0 : i32
    return %arg0, %arg2, %c0_i32 : i32, i32, i32
  }
  func.func @transform_3(%arg0: i32, %arg1: i32, %arg2: i32) -> (i32, i32, i32) {
    %c0_i32 = arith.constant 0 : i32
    %c0_i32_0 = arith.constant 0 : i32
    return %arg0, %arg1, %c0_i32 : i32, i32, i32
  }
}

</mosaic_0001>

<bundles_post_ra>
// kernel: tpu_custom_call.1
= control target key start
LH: loop header
LB: loop body
LE: loop exit
PB: predicated region body
PF: predicated region fallthrough
CT: control target
= control target key end

     0   :  { %s1747_s0 = inlined_call_operand.hbm [shape: f32[2,8,128], index: 0, kind: input, shape index: {}]   ;;  %s1748_s1 = inlined_call_operand.hbm [shape: f32[2,8,128], index: 1, kind: input, shape index: {}]   ;;  %s1749_s2 = inlined_call_operand.hbm [shape: f32[2,8,128], index: 2, kind: input, shape index: {}]   ;;  %s1750_s3 = inlined_call_operand.hbm [shape: f32[2,8,128], index: 3, kind: output, shape index: {}]  }
   0x1   :  { %1754 = sst [smem:[#allocation17_spill]] %s1748_s1 }
   0x2   :  { %8 = vsyncpa [#allocation6], 0 }
   0x3   :  { %10 = vsyncpa [#allocation6 + $0x1], 0 }
   0x4   :  { %11 = vsyncpa [#allocation9], 0 }
   0x5   :  { %13 = vsyncpa [#allocation9 + $0x1], 0 }
   0x6   :  { %14 = vsyncpa [#allocation7], 0 }
   0x7   :  { %16 = vsyncpa [#allocation7 + $0x1], 0  ;;  %s1436_s12 = smov 0   ;;  %s1438_s13 = smov 0  }
   0x8   :  { %s1440_s14 = smov 0   ;;  %s1442_s15 = smov 0  }
   0x9   :  { %s1444_s16 = smov 0   ;;  %s1446_s17 = smov 0  }
   0xa LB: > { %1755 = sst [smem:[#allocation15_spill]] %s1399_s16  ;;  %s1467_s18 = sadd.s32 4294967295, %s1403_s17   ;;  %s1403_s17 = sphi %s1446_s17, %s22_s17   ;;  %s1399_s16 = sphi %s1444_s16, %s1767_s16   ;;  %s1395_s15 = sphi %s1442_s15, %s1766_s15   ;;  %s1391_s14 = sphi %s1440_s14, %s1770_s14   ;;  %s1387_s13 = sphi %s1438_s13, %s1769_s13   ;;  %s1383_s12 = sphi %s1436_s12, %s1768_s12  }
   0xb   : > { %s1046_s19 = sadd.s32 4294967294, %s1403_s17   ;;  %s41_s20 = sadd.s32 1, %s1399_s16 }
   0xc   : > { %s50_s21 = sadd.s32 1, %s1391_s14  ;;  %p43_p0 = scmp.ge.s32.totalorder %s41_s20, 2 }
   0xd   : > { %p57_p1 = scmp.ne.s32.totalorder %s1391_s14, %s1387_s13  ;;  %p58_p2 = scmp.eq.s32.totalorder %s1403_s17, 0 }
   0xe   : > { %p63_p3 = scmp.ne.s32.totalorder %s1387_s13, %s1383_s12  ;;  %s1772_s20 = smov (%p43_p0, %s41_s20), 0 }
   0xf   : > { %1756 = sst [smem:[#allocation16_spill]] %s1772_s20  ;;  %p1479_p4 = por %p58_p2, %p57_p1 }
  0x10   : > { %p64_p5 = scmp.eq.s32.totalorder %s1467_s18, 0  ;;  %s45_s23 = ssub.s32 %s1399_s16, %s1772_s20 }
  0x11   : > { %p145_p6 = scmp.eq.s32.totalorder %s1467_s18, 1  ;;  %p48_p7 = scmp.eq.s32.totalorder %s45_s23, 0 }
  0x12   : > { %p1487_p8 = por %p64_p5, %p63_p3  ;;  %p151_p10 = scmp.eq.s32.totalorder %s1046_s19, 1 }
  0x13   : > { %p1491_p9 = por %p145_p6, %p57_p1  ;;  %p1158_p13 = scmp.lt.s32.totalorder %s1403_s17, 2 }
  0x14   : > { %s1496_s26 = scalar_select %p48_p7, %s1391_s14, %s50_s21  }
  0x15   : > { %p1498_p11 = por %p151_p10, %p63_p3  ;;  %s1751_s28 = sand.u32 1, %s1391_s14  }
  0x16   : > { %s1507_s29 = sshll.u32 %s1751_s28, 3  ;;  %s1510_s30 = sshll.u32 %s1399_s16, 7 }
  0x17   : > { %p1514_p0 = pnand %p1158_p13, %p1479_p4  ;;  %s190_s5 = sand.u32 1, %s1403_s17  }
  0x18   : > { %s1762_s1 = sld [smem:[#allocation17_spill]]  ;;  %s194_s9 = scalar_lea.vmem [#allocation8], %s1507_s29 }
  0x19   : > { %s202_s10 = sshll.u32 %s194_s9, 4  ;;  %p1055_p1 = scmp.ge.s32.totalorder %s1403_s17, 1  ;;  %s203_s10 = int_to_ptr.vmem [resolvable:$true] %s202_s10 }
  0x1a   : > { %p226_p2 = scmp.lt.s32.totalorder %s1403_s17, 3  ;;  %s1526_s11 = scalar_lea.sflag [#allocation9], %s190_s5 }
  0x1b   : > { %p1237_p3 = pneg %p1514_p0  ;;  %s1248_s19 = scalar_lea.vmem %s203_s10, 128 }
  0x1c   : > { %p1249_p4 = scmp.ne.s32.totalorder %s203_s10, %s1248_s19  ;;  %s1405_s21 = smov [#allocation8]  }
  0x1d   : > { %s1253_s22 = sshll.u32 %s1405_s21, 4  ;;  %s1254_s22 = int_to_ptr.vmem [resolvable:$false] %s1253_s22 }
  0x1e   : > { %s200_s8 = scalar_lea.hbm %s1762_s1, %s1510_s30  ;;  %p1251_p5 = pnand %p1249_p4, %p1237_p3 }
  0x1f   : > { %s1255_s23 = scalar_lea.vmem %s1254_s22, 256  ;;  %p1256_p7 = scmp.lt.s32.totalorder %s203_s10, %s1254_s22 }
  0x20   : > { %p1252_p6 = pneg %p1251_p5  ;;  %p1257_p10 = scmp.lt.s32.totalorder %s1255_s23, %s1248_s19 }
  0x22   : > { %p1258_p13 = por %p1257_p10, %p1256_p7 }
  0x24   : > { %p1259_p12 = pnand %p1258_p13, %p1252_p6 }
  0x26   : > { %1262 = shalt.err (!%p1259_p12)
}
  0x27   : > { %1150 = dma.hbm_to_vmem [thread:$0]  (!%p1514_p0), %s200_s8, 128, %s203_s10, %s1526_s11  }
  0x28   : > { %p1540_p4 = pnand %p1055_p1, %p226_p2  ;;  %s181_s9 = scalar_lea.hbm %s1747_s0, %s1510_s30 }
  0x29   : > { %s175_s19 = scalar_lea.vmem [#allocation5], %s1507_s29  ;;  %s219_s28 = scalar_lea.hbm %s1749_s2, %s1510_s30 }
  0x2a   : > { %s183_s21 = sshll.u32 %s175_s19, 4  ;;  %s1764_s1 = sand.u32 1, %s1391_s14   ;;  %s184_s21 = int_to_ptr.vmem [resolvable:$true] %s183_s21 }
  0x2b   : > { %s172_s20 = scalar_lea.sflag [#allocation6], %s1764_s1  ;;  %s1276_s8 = scalar_lea.vmem %s184_s21, 128 }
  0x2c   : > { %p1277_p12 = scmp.ne.s32.totalorder %s184_s21, %s1276_s8  ;;  %s1406_s10 = smov [#allocation5]  }
  0x2d   : > { %s1281_s16 = sshll.u32 %s1406_s10, 4  ;;  %s1282_s16 = int_to_ptr.vmem [resolvable:$false] %s1281_s16 }
  0x2e   : > { %p1279_p1 = pnand %p1277_p12, %p1237_p3  ;;  %s1283_s6 = scalar_lea.vmem %s1282_s16, 256 }
  0x2f   : > { %p1284_p5 = scmp.lt.s32.totalorder %s184_s21, %s1282_s16  ;;  %p1285_p6 = scmp.lt.s32.totalorder %s1283_s6, %s1276_s8 }
  0x30   : > { %p1280_p2 = pneg %p1279_p1 }
  0x31   : > { %p1286_p7 = por %p1285_p6, %p1284_p5 }
  0x33   : > { %p1287_p10 = pnand %p1286_p7, %p1280_p2 }
  0x35   : > { %1290 = shalt.err (!%p1287_p10)
}
  0x36   : > { %1147 = dma.hbm_to_vmem [thread:$0]  (!%p1514_p0), %s181_s9, 128, %s184_s21, %s172_s20  }
  0x37   : > { %s213_s1 = scalar_lea.vmem [#allocation10], %s1507_s29  ;;  %s1407_s22 = smov [#allocation10]  }
  0x38   : > { %s221_s7 = sshll.u32 %s213_s1, 4  ;;  %s1309_s16 = sshll.u32 %s1407_s22, 4  ;;  %s222_s7 = int_to_ptr.vmem [resolvable:$true] %s221_s7  ;;  %s1310_s16 = int_to_ptr.vmem [resolvable:$false] %s1309_s16 }
  0x39   : > { %s1304_s19 = scalar_lea.vmem %s222_s7, 128  ;;  %s1311_s23 = scalar_lea.vmem %s1310_s16, 256 }
  0x3a   : > { %p1305_p13 = scmp.ne.s32.totalorder %s222_s7, %s1304_s19  ;;  %p1312_p2 = scmp.lt.s32.totalorder %s222_s7, %s1310_s16 }
  0x3b   : > { %p1313_p5 = scmp.lt.s32.totalorder %s1311_s23, %s1304_s19 }
  0x3c   : > { %p1307_p12 = pnand %p1305_p13, %p1237_p3 }
  0x3d   : > { %p1314_p6 = por %p1313_p5, %p1312_p2 }
  0x3e   : > { %p1308_p1 = pneg %p1307_p12 }
  0x40   : > { %p1315_p7 = pnand %p1314_p6, %p1308_p1 }
  0x42   : > { %1318 = shalt.err (!%p1315_p7)
}
  0x43   : > { %1153 = dma.hbm_to_vmem [thread:$0]  (!%p1514_p0), %s219_s28, 128, %s222_s7, %s1526_s11  }
  0x44   : > { %230 = sbr.rel (%p1540_p4) target bundleno = 1423 (0x58f), region = 32  ;;  %s1575_s9 = sand.u32 (!%p1540_p4), 1, %s1387_s13  }
  0x45   : > { %s1578_s21 = sshll.u32 (!%p1540_p4), %s1575_s9, 3  ;;  %s233_s4 = scalar_lea.sflag (!%p1540_p4), [#allocation6], %s1575_s9 }
  0x46   : > { %s236_s8 = scalar_lea.vmem (!%p1540_p4), [#allocation5], %s1578_s21 }
  0x49   : > { %1370 = dma.done.wait (%p1487_p8), %s233_s4, 128  }
  0x4a   : > { %1372 = vsyncadd (%p1487_p8), %s233_s4, 4294967168  ;;  %s241_s28 = sand.u32 1, %s1467_s18   ;;  %s245_s11 = scalar_lea.vmem [#allocation8], %s1578_s21 }
  0x4b   : > { %s242_s30 = scalar_lea.sflag [#allocation9], %s241_s28 }
  0x4c   : > { %1374 = dma.done.wait (%p1487_p8), %s242_s30, 256  }
  0x4d   : > { %1376 = vsyncadd (%p1487_p8), %s242_s30, 4294967040  ;;  %v1408_v0 = vmov 0.0   ;;  %vm1409_vm0 = vmmov 0   ;;  %v305_v1 = vld [vmem:[%s245_s11] sm:$0xff]  ;;  %vm309_vm1 = vcmask 261120   ;;  %v302_v2 = vld [vmem:[%s236_s8] sm:$0xff] }
  0x4e   : > { %1088 = vmatprep.subr.bf16.mxu0 %v1408_v0  ;;  %1090 = vmatprep.mubr.msk.bf16.mxu0 %vm1409_vm0, %v1408_v0  ;;  %v306_v3 = vpack.c.bf16 %v305_v1, %v305_v1  ;;  %v303_v5 = vmul.f32 0.17677669, %v302_v2  ;;  %vm292_vm2 = vcmask 7168   ;;  %v1410_v7 = vmov -inf   ;;  %s1412_s18 = smov 96   ;;  %s1413_s24 = smov 64  }
  0x4f   : > { %1094 = vmatprep.subr.bf16.mxu1 %v1408_v0  ;;  %1096 = vmatprep.mubr.msk.bf16.mxu1 %vm1409_vm0, %v1408_v0  ;;  %293 = vst.msk [vmem:[#allocation2] sm:$0xff] %vm292_vm2, %v1410_v7  ;;  %294 = vst.msk [vmem:[#allocation2 + $0x8] sm:$0xff] %vm292_vm2, %v1410_v7  ;;  %vm357_vm3 = vcmask 64512   ;;  %v1411_v13 = vmov 0   ;;  %s1414_s5 = smov 32   ;;  %s254_s10 = scalar_lea.vmem [#allocation10], %s1578_s21 }
  0x50   : > { %v314_v4 = vsel %vm309_vm1, %v306_v3, 0  ;;  %v304_v6 = vpack.c.bf16 %v303_v5, %v303_v5  ;;  %295 = vst.msk [vmem:[#allocation2 + $0x10] sm:$0xff] %vm292_vm2, %v1410_v7  ;;  %296 = vst.msk [vmem:[#allocation2 + $0x18] sm:$0xff] %vm292_vm2, %v1410_v7  ;;  %1215 = vset.pattern.permute.xlu0 %v1411_v13  ;;  %1216 = vset.pattern.permute.xlu1 %v1411_v13  ;;  %v307_v18 = vld [vmem:[%s254_s10] sm:$0xff]  ;;  %vm386_vm4 = vcmask 1043456   ;;  %vm845_vm5 = vcmask 523264  }
  0x51   : > { %1089 = vmatpush3.bf16.xpose.msra.mxu0 %v314_v4  ;;  %297 = vst.msk [vmem:[#allocation3] sm:$0xff] %vm292_vm2, %v1408_v0  ;;  %298 = vst.msk [vmem:[#allocation3 + $0x8] sm:$0xff] %vm292_vm2, %v1408_v0  ;;  %443 = vrot.lane.b32.xlu1 %v306_v3, %s1412_s18  ;;  %v1633_v19 = vpack.c.bf16 %v307_v18, %v307_v18  ;;  %vm847_vm6 = vcmask 785408   ;;  %s1069_s6 = sshll.u32 %s1395_s15, 7  ;;  %s286_s1 = scalar_lea.vmem [#allocation11], %s1578_s21 }
  0x52   : > { %1106 = vmatprep.subr.bf16.mxu0 %v1408_v0  ;;  %299 = vst.msk [vmem:[#allocation3 + $0x10] sm:$0xff] %vm292_vm2, %v1408_v0  ;;  %300 = vst.msk [vmem:[#allocation3 + $0x18] sm:$0xff] %vm292_vm2, %v1408_v0  ;;  %s917_s7 = sshll.u32 %s286_s1, 4  ;;  %s915_s16 = scalar_lea.hbm %s1750_s3, %s1069_s6  ;;  %s918_s7 = int_to_ptr.vmem [resolvable:$true] %s917_s7 }
  0x53   : > { %v388_v20 = vsel %vm386_vm4, %v1633_v19, 0  ;;  %s903_s23 = scalar_lea.sflag [#allocation7], %s1575_s9  ;;  %s1319_s20 = scalar_lea.vmem %s918_s7, 128 }
  0x54   : > { %1095 = vmatpush3.bf16.msra.mxu1 %v388_v20  ;;  %p1320_p8 = scmp.ne.s32.totalorder %s918_s7, %s1319_s20  ;;  %s1415_s29 = smov [#allocation11]  }
  0x55   : > { %440 = vrot.lane.b32.xlu1 %v304_v6, %s1412_s18  ;;  %1100 = vmatprep.subr.bf16.mxu1 %v1408_v0  ;;  %s1323_s4 = sshll.u32 %s1415_s29, 4  ;;  %s1324_s4 = int_to_ptr.vmem [resolvable:$false] %s1323_s4 }
  0x56   : > { %v1622_v14 = vld [vmem:[#allocation2] sm:$0xff]  ;;  %v492_v54 = vld [vmem:[#allocation2 + $0x8] sm:$0xff]  ;;  %p1321_p0 = pnand %p1320_p8, %p1491_p9  ;;  %s1325_s15 = scalar_lea.vmem %s1324_s4, 256 }
  0x57   : > { %v1663_v58 = vld [vmem:[#allocation2 + $0x10] sm:$0xff]  ;;  %v764_v62 = vld [vmem:[#allocation2 + $0x18] sm:$0xff]  ;;  %p1326_p4 = scmp.lt.s32.totalorder %s918_s7, %s1324_s4  ;;  %p1327_p10 = scmp.lt.s32.totalorder %s1325_s15, %s1319_s20 }
  0x58   : > { %1091 = vmatmul.mubr.msk.bf16.vlgmr.msra.gmra.mxu0 %vm309_vm1, %v304_v6  ;;  %p1322_p3 = pneg %p1321_p0 }
  0x59   : > { %1108 = vmatprep.mubr.msk.bf16.mxu0 %vm1409_vm0, %v1408_v0  ;;  %579 = vrot.lane.b32.xlu1 %v306_v3, %s1413_s24  ;;  %p1328_p13 = por %p1327_p10, %p1326_p4 }
  0x5b   : > { %p1329_p12 = pnand %p1328_p13, %p1322_p3 }
  0x5d   : > { %576 = vrot.lane.b32.xlu1 %v304_v6, %s1413_s24 }
  0x61   : > { %715 = vrot.lane.b32.xlu1 %v306_v3, %s1414_s5 }
  0x65   : > { %712 = vrot.lane.b32.xlu1 %v304_v6, %s1414_s5 }
  0xc3   : > { %v444_v24 = vpop.permute.xlu1 %443 }
  0xc4   : > { %v449_v27 = vsel %vm309_vm1, %v444_v24, 0 }
  0xc7   : > { %v441_v25 = vpop.permute.xlu1 %440 }
  0xcb   : > { %v580_v29 = vpop.permute.xlu1 %579 }
  0xcc   : > { %v585_v31 = vsel %vm309_vm1, %v580_v29, 0 }
  0xcf   : > { %v577_v30 = vpop.permute.xlu1 %576 }
  0xd3   : > { %v716_v32 = vpop.permute.xlu1 %715 }
  0xd4   : > { %v721_v33 = vsel %vm309_vm1, %v716_v32, 0 }
  0xd7   : > { %v713_v34 = vpop.permute.xlu1 %712 }
 0x118   : > { %v350_v8 = vpop.f32.mrf.mxu0 }
 0x119   : > { %v358_v9 = vsel %vm357_vm3, %v350_v8, -inf }
 0x11a   : > { %359 = vmax.xlane.f32.xlu0 %v358_v9  ;;  %v1092_v10 = vpop.f32.mrf.mxu0 }
 0x11c   : > { %v353_v11 = vpop.f32.mrf.mxu0 }
 0x11e   : > { %v1093_v12 = vpop.f32.mrf.mxu0 }
 0x1a3   : > { %v360_v15 = vpop.xlane.xlu0 %359 }
 0x1a4   : > { %v1625_v16 = vmax.f32 %v1622_v14, %v360_v15 }
 0x1a6   : > { %v362_v17 = vsub.f32 %v1622_v14, %v1625_v16  ;;  %381 = vst.msk [vmem:[#allocation2] sm:$0xff] %vm292_vm2, %v1625_v16  ;;  %367 = vperm.xlu0 %1215, %v1625_v16   ;;  %v509_v16 = vld [vmem:[#allocation3 + $0x8] sm:$0xff] }
 0x221   : > { %v368_v21 = vpop.permute.xlu0 %367 }
 0x222   : > { %v370_v22 = vsub.f32 %v350_v8, %v368_v21 }
 0x224   : > { %v371_v23 = vmul.f32 1.442695, %v370_v22 }
 0x226   : > { %1217 = vpow2.f32 %v371_v23 }
 0x233   : > { %v1638_v26 = vpop.eup %1217 }
 0x234   : > { %v382_v28 = vpack.c.bf16 %v1638_v26, %v1638_v26  ;;  %v375_v3 = vsel %vm357_vm3, %v1638_v26, 0.0 }
 0x236   : > { %1097 = vmatmul.mubr.msk.bf16.vlgmr.msra.gmra.mxu1 %vm357_vm3, %v382_v28 }
 0x237   : > { %1101 = vmatpush3.bf16.xpose.msra.mxu1 %v449_v27  ;;  %1102 = vmatprep.mubr.msk.bf16.mxu1 %vm1409_vm0, %v1408_v0 }
 0x238   : > { %1112 = vmatprep.subr.bf16.mxu1 %v1408_v0 }
 0x23e   : > { %1103 = vmatmul.mubr.msk.bf16.vlgmr.msra.gmra.mxu1 %vm309_vm1, %v441_v25 }
 0x23f   : > { %1113 = vmatpush3.bf16.xpose.msra.mxu1 %v585_v31  ;;  %1114 = vmatprep.mubr.msk.bf16.mxu1 %vm1409_vm0, %v1408_v0 }
 0x240   : > { %1124 = vmatprep.subr.bf16.mxu1 %v1408_v0 }
 0x246   : > { %1115 = vmatmul.mubr.msk.bf16.vlgmr.msra.gmra.mxu1 %vm309_vm1, %v577_v30 }
 0x247   : > { %1125 = vmatpush3.bf16.xpose.msra.mxu1 %v721_v33  ;;  %1126 = vmatprep.mubr.msk.bf16.mxu1 %vm1409_vm0, %v1408_v0  ;;  %v363_v33 = vmul.f32 1.442695, %v362_v17 }
 0x24e   : > { %1127 = vmatmul.mubr.msk.bf16.vlgmr.msra.gmra.mxu1 %vm309_vm1, %v713_v34 }
 0x2f6   : > { %v1657_v35 = vpop.f32.mrf.mxu1 }
 0x2f8   : > { %v1098_v36 = vpop.f32.mrf.mxu1 }
 0x2fa   : > { %v427_v37 = vpop.f32.mrf.mxu1 }
 0x2fc   : > { %v1099_v38 = vpop.f32.mrf.mxu1 }
 0x2fe   : > { %v485_v39 = vpop.f32.mrf.mxu1 }
 0x2ff   : > { %v493_v40 = vsel %vm357_vm3, %v485_v39, -inf }
 0x300   : > { %494 = vmax.xlane.f32.xlu1 %v493_v40  ;;  %v1104_v41 = vpop.f32.mrf.mxu1 }
 0x302   : > { %v488_v42 = vpop.f32.mrf.mxu1 }
 0x304   : > { %v1105_v43 = vpop.f32.mrf.mxu1 }
 0x306   : > { %v621_v44 = vpop.f32.mrf.mxu1 }
 0x307   : > { %v629_v45 = vsel %vm357_vm3, %v621_v44, -inf }
 0x308   : > { %630 = vmax.xlane.f32.xlu0 %v629_v45  ;;  %v1116_v46 = vpop.f32.mrf.mxu1  ;;  %v645_v45 = vld [vmem:[#allocation3 + $0x10] sm:$0xff] }
 0x30a   : > { %v624_v47 = vpop.f32.mrf.mxu1 }
 0x30c   : > { %v1117_v48 = vpop.f32.mrf.mxu1 }
 0x30e   : > { %v757_v49 = vpop.f32.mrf.mxu1 }
 0x30f   : > { %v765_v50 = vsel %vm357_vm3, %v757_v49, -inf }
 0x310   : > { %766 = vmax.xlane.f32.xlu1 %v765_v50  ;;  %v1128_v51 = vpop.f32.mrf.mxu1  ;;  %v781_v50 = vld [vmem:[#allocation3 + $0x18] sm:$0xff] }
 0x312   : > { %v760_v52 = vpop.f32.mrf.mxu1 }
 0x314   : > { %v1129_v53 = vpop.f32.mrf.mxu1 }
 0x389   : > { %v495_v55 = vpop.xlane.xlu1 %494 }
 0x38a   : > { %v496_v56 = vmax.f32 %v492_v54, %v495_v55 }
 0x38c   : > { %v497_v57 = vsub.f32 %v492_v54, %v496_v56  ;;  %516 = vst.msk [vmem:[#allocation2 + $0x8] sm:$0xff] %vm292_vm2, %v496_v56  ;;  %502 = vperm.xlu1 %1216, %v496_v56  }
 0x38e   : > { %v498_v24 = vmul.f32 1.442695, %v497_v57 }
 0x391   : > { %v631_v59 = vpop.xlane.xlu0 %630 }
 0x392   : > { %v632_v60 = vmax.f32 %v1663_v58, %v631_v59 }
 0x394   : > { %v633_v61 = vsub.f32 %v1663_v58, %v632_v60  ;;  %652 = vst.msk [vmem:[#allocation2 + $0x10] sm:$0xff] %vm292_vm2, %v632_v60  ;;  %638 = vperm.xlu0 %1215, %v632_v60  }
 0x396   : > { %v634_v36 = vmul.f32 1.442695, %v633_v61 }
 0x399   : > { %v767_v63 = vpop.xlane.xlu1 %766 }
 0x39a   : > { %v768_v1 = vmax.f32 %v764_v62, %v767_v63 }
 0x39c   : > { %v769_v2 = vsub.f32 %v764_v62, %v768_v1  ;;  %788 = vst.msk [vmem:[#allocation2 + $0x18] sm:$0xff] %vm292_vm2, %v768_v1  ;;  %774 = vperm.xlu1 %1216, %v768_v1  }
 0x39e   : > { %v770_v27 = vmul.f32 1.442695, %v769_v2 }
 0x3a0   : > { %519 = vrot.lane.b32.xlu1 %v1633_v19, %s1412_s18 }
 0x3a4   : > { %655 = vrot.lane.b32.xlu1 %v1633_v19, %s1413_s24 }
 0x3a8   : > { %791 = vrot.lane.b32.xlu1 %v1633_v19, %s1414_s5 }
 0x3cc   : > { %376 = vadd.xlane.f32.xlu1 %v375_v3 }
 0x407   : > { %v503_v4 = vpop.permute.xlu1 %502 }
 0x408   : > { %v505_v5 = vsub.f32 %v485_v39, %v503_v4  ;;  %v373_v39 = vld [vmem:[#allocation3] sm:$0xff] }
 0x40a   : > { %v506_v6 = vmul.f32 1.442695, %v505_v5 }
 0x40c   : > { %1219 = vpow2.f32 %v506_v6 }
 0x40f   : > { %v639_v7 = vpop.permute.xlu0 %638 }
 0x410   : > { %v641_v8 = vsub.f32 %v621_v44, %v639_v7 }
 0x412   : > { %v642_v9 = vmul.f32 1.442695, %v641_v8 }
 0x414   : > { %1221 = vpow2.f32 %v642_v9 }
 0x417   : > { %v775_v10 = vpop.permute.xlu1 %774 }
 0x418   : > { %v777_v11 = vsub.f32 %v757_v49, %v775_v10 }
 0x419   : > { %v1220_v12 = vpop.eup %1219 }
 0x41a   : > { %v778_v13 = vmul.f32 1.442695, %v777_v11  ;;  %v511_v15 = vsel %vm357_vm3, %v1220_v12, 0.0  ;;  %v517_v20 = vpack.c.bf16 %v1220_v12, %v1220_v12 }
 0x41b   : > { %512 = vadd.xlane.f32.xlu0 %v511_v15  ;;  %v520_v18 = vpop.permute.xlu1 %519 }
 0x41c   : > { %1223 = vpow2.f32 %v778_v13  ;;  %v525_v19 = vsel %vm386_vm4, %v520_v18, 0 }
 0x41d   : > { %1107 = vmatpush3.bf16.msra.mxu0 %v525_v19  ;;  %1225 = vpow2.f32 %v498_v24 }
 0x41e   : > { %1118 = vmatprep.subr.bf16.mxu0 %v1408_v0  ;;  %1227 = vpow2.f32 %v770_v27 }
 0x41f   : > { %v656_v21 = vpop.permute.xlu1 %655  ;;  %1229 = vpow2.f32 %v363_v33 }
 0x420   : > { %1109 = vmatmul.mubr.msk.bf16.vlgmr.msra.gmra.mxu0 %vm357_vm3, %v517_v20  ;;  %v661_v22 = vsel %vm386_vm4, %v656_v21, 0  ;;  %1231 = vpow2.f32 %v634_v36 }
 0x421   : > { %v1222_v23 = vpop.eup %1221  ;;  %1119 = vmatpush3.bf16.msra.mxu0 %v661_v22  ;;  %1120 = vmatprep.mubr.msk.bf16.mxu0 %vm1409_vm0, %v1408_v0 }
 0x422   : > { %v647_v25 = vsel %vm357_vm3, %v1222_v23, 0.0  ;;  %1130 = vmatprep.subr.bf16.mxu0 %v1408_v0  ;;  %v653_v28 = vpack.c.bf16 %v1222_v23, %v1222_v23 }
 0x423   : > { %648 = vadd.xlane.f32.xlu1 %v647_v25  ;;  %v792_v26 = vpop.permute.xlu1 %791 }
 0x424   : > { %v797_v29 = vsel %vm386_vm4, %v792_v26, 0 }
 0x428   : > { %1121 = vmatmul.mubr.msk.bf16.vlgmr.msra.gmra.mxu0 %vm357_vm3, %v653_v28 }
 0x429   : > { %v1224_v30 = vpop.eup %1223  ;;  %1131 = vmatpush3.bf16.msra.mxu0 %v797_v29  ;;  %1132 = vmatprep.mubr.msk.bf16.mxu0 %vm1409_vm0, %v1408_v0 }
 0x42a   : > { %v783_v31 = vsel %vm357_vm3, %v1224_v30, 0.0  ;;  %v789_v32 = vpack.c.bf16 %v1224_v30, %v1224_v30  ;;  %v1226_v34 = vpop.eup %1225 }
 0x42b   : > { %784 = vadd.xlane.f32.xlu0 %v783_v31  ;;  %v1228_v37 = vpop.eup %1227  ;;  %v510_v17 = vmul.f32 %v1226_v34, %v509_v16 }
 0x42c   : > { %v1230_v38 = vpop.eup %1229  ;;  %v782_v51 = vmul.f32 %v1228_v37, %v781_v50 }
 0x42d   : > { %v1232_v0 = vpop.eup %1231  ;;  %v374_v40 = vmul.f32 %v1230_v38, %v373_v39 }
 0x42e   : > { %v646_v46 = vmul.f32 %v1232_v0, %v645_v45 }
 0x430   : > { %1133 = vmatmul.mubr.msk.bf16.vlgmr.msra.gmra.mxu0 %vm357_vm3, %v789_v32 }
 0x434   : > { %569 = vperm.xlu1 %1216, %v1226_v34  }
 0x438   : > { %841 = vperm.xlu1 %1216, %v1228_v37  }
 0x441   : > { %432 = vperm.xlu0 %1215, %v1230_v38  }
 0x445   : > { %705 = vperm.xlu0 %1215, %v1232_v0  }
 0x455   : > { %v377_v41 = vpop.xlane.xlu1 %376 }
 0x456   : > { %v378_v42 = vadd.f32 %v377_v41, %v374_v40 }
 0x458   : > { %380 = vst.msk [vmem:[#allocation3] sm:$0xff] %vm292_vm2, %v378_v42 }
 0x45f   : > { %v871_v14 = vld [vmem:[#allocation3] sm:$0xff] }
 0x460   : > { %874 = vperm.xlu0 %1215, %v871_v14  }
 0x4a4   : > { %v513_v43 = vpop.xlane.xlu0 %512 }
 0x4a5   : > { %v514_v44 = vadd.f32 %v513_v43, %v510_v17 }
 0x4a7   : > { %515 = vst.msk [vmem:[#allocation3 + $0x8] sm:$0xff] %vm292_vm2, %v514_v44 }
 0x4ac   : > { %v649_v47 = vpop.xlane.xlu1 %648 }
 0x4ad   : > { %v650_v48 = vadd.f32 %v649_v47, %v646_v46 }
 0x4ae   : > { %v877_v49 = vld [vmem:[#allocation3 + $0x8] sm:$0xff] }
 0x4af   : > { %651 = vst.msk [vmem:[#allocation3 + $0x10] sm:$0xff] %vm292_vm2, %v650_v48  ;;  %880 = vperm.xlu1 %1216, %v877_v49  }
 0x4b0   : > { %v570_v5 = vpop.permute.xlu1 %569 }
 0x4b4   : > { %v785_v52 = vpop.xlane.xlu0 %784  ;;  %v842_v7 = vpop.permute.xlu1 %841 }
 0x4b5   : > { %v786_v53 = vadd.f32 %v785_v52, %v782_v51 }
 0x4b6   : > { %v883_v61 = vld [vmem:[#allocation3 + $0x10] sm:$0xff] }
 0x4b7   : > { %787 = vst.msk [vmem:[#allocation3 + $0x18] sm:$0xff] %vm292_vm2, %v786_v53 }
 0x4bc   : > { %v433_v6 = vpop.permute.xlu0 %432 }
 0x4bd   : > { %v844_v22 = vsel %vm309_vm1, %v433_v6, %v570_v5 }
 0x4be   : > { %v889_v3 = vld [vmem:[#allocation3 + $0x18] sm:$0xff] }
 0x4c0   : > { %v706_v8 = vpop.permute.xlu0 %705 }
 0x4c1   : > { %v846_v23 = vsel %vm845_vm5, %v844_v22, %v706_v8 }
 0x4c2   : > { %v848_v24 = vsel %vm847_vm6, %v846_v23, %v842_v7 }
 0x4c3   : > { %v865_v28 = vmul.f32 0.0, %v848_v24 }
 0x4db   : > { %v875_v10 = vpop.permute.xlu0 %874 }
 0x4e0   : > { %v561_v54 = vpop.f32.mrf.mxu0 }
 0x4e1   : > { %850 = vrot.lane.b32.xlu1 %v561_v54, %s1414_s5 }
 0x4e2   : > { %v1110_v55 = vpop.f32.mrf.mxu0 }
 0x4e4   : > { %v564_v56 = vpop.f32.mrf.mxu0 }
 0x4e6   : > { %v1111_v57 = vpop.f32.mrf.mxu0 }
 0x4e8   : > { %v697_v58 = vpop.f32.mrf.mxu0 }
 0x4e9   : > { %854 = vrot.lane.b32.xlu0 %v697_v58, %s1413_s24 }
 0x4ea   : > { %v1122_v59 = vpop.f32.mrf.mxu0 }
 0x4ec   : > { %v700_v60 = vpop.f32.mrf.mxu0 }
 0x4ed   : > { %886 = vperm.xlu0 %1215, %v883_v61  }
 0x4ee   : > { %v1123_v62 = vpop.f32.mrf.mxu0 }
 0x4f0   : > { %v833_v63 = vpop.f32.mrf.mxu0 }
 0x4f1   : > { %858 = vrot.lane.b32.xlu1 %v833_v63, %s1412_s18 }
 0x4f2   : > { %v1134_v1 = vpop.f32.mrf.mxu0 }
 0x4f4   : > { %v836_v2 = vpop.f32.mrf.mxu0 }
 0x4f5   : > { %892 = vperm.xlu1 %1216, %v889_v3  }
 0x4f6   : > { %v1135_v4 = vpop.f32.mrf.mxu0 }
 0x52a   : > { %v881_v9 = vpop.permute.xlu1 %880 }
 0x52b   : > { %v895_v18 = vsel %vm309_vm1, %v875_v10, %v881_v9 }
 0x553   : > { %v851_v11 = vpop.permute.xlu1 %850 }
 0x554   : > { %v861_v25 = vsel %vm309_vm1, %v1657_v35, %v851_v11 }
 0x55b   : > { %v855_v12 = vpop.permute.xlu0 %854 }
 0x55c   : > { %v862_v26 = vsel %vm845_vm5, %v861_v25, %v855_v12 }
 0x563   : > { %v859_v13 = vpop.permute.xlu1 %858 }
 0x564   : > { %v863_v27 = vsel %vm847_vm6, %v862_v26, %v859_v13 }
 0x565   : > { %v866_v29 = vadd.f32 %v865_v28, %v863_v27 }
 0x568   : > { %v887_v15 = vpop.permute.xlu0 %886 }
 0x569   : > { %v896_v19 = vsel %vm845_vm5, %v895_v18, %v887_v15 }
 0x570   : > { %v893_v20 = vpop.permute.xlu1 %892 }
 0x571   : > { %v897_v21 = vsel %vm847_vm6, %v896_v19, %v893_v20 }
 0x572   : > { %1233 = vrcp.f32 %v897_v21 }
 0x57f   : > { %v1234_v30 = vpop.eup %1233 }
 0x580   : > { %v900_v31 = vmul.f32 %v1234_v30, %v866_v29 }
 0x582   : > { %901 = vst [vmem:[%s286_s1] sm:$0xff] %v900_v31 }
 0x583   : > { %1332 = shalt.err (!%p1329_p12)
}
 0x584   : > { %s1333_s21 = scalar_lea.hbm %s915_s16, 128  ;;  %s1337_s28 = scalar_lea.hbm %s1750_s3, 256 }
 0x585   : > { %p1334_p1 = scmp.ne.s32.totalorder %s915_s16, %s1333_s21  ;;  %p1338_p6 = scmp.lt.s32.totalorder %s915_s16, %s1750_s3 }
 0x586   : > { %p1339_p7 = scmp.lt.s32.totalorder %s1337_s28, %s1333_s21 }
 0x587   : > { %p1335_p2 = pnand %p1334_p1, %p1491_p9 }
 0x588   : > { %p1340_p8 = por %p1339_p7, %p1338_p6 }
 0x589   : > { %p1336_p5 = pneg %p1335_p2 }
 0x58b   : > { %p1341_p0 = pnand %p1340_p8, %p1336_p5 }
 0x58d   : > { %1344 = shalt.err (!%p1341_p0)
}
 0x58e   : > { %1142 = dma.vmem_to_hbm [thread:$0]  (%p1491_p9), %s918_s7, 128, %s915_s16, %s903_s23  }
 0x58f PF: > { %s929_s18 = sand.u32 1, %s1383_s12   ;;  %p1765_p3 = scmp.ge.s32.totalorder %s1403_s17, 2 }
 0x590   : > { %s930_s24 = scalar_lea.sflag [#allocation7], %s929_s18 }
 0x591   : > { %p1155_p4 = pnand %p1765_p3, %p1498_p11 }
 0x593   : > { %p1156_p10 = pneg %p1155_p4 }
 0x595   : > { %1378 = dma.done.wait (%p1156_p10), %s930_s24, 128  }
 0x596   : > { %1380 = vsyncadd (%p1156_p10), %s930_s24, 4294967168  ;;  %s22_s17 = sadd.s32 1, %s1403_s17   ;;  %s1766_s15 = sld [smem:[#allocation15_spill]] }
 0x597   : > { %p19_p13 = scmp.ge.s32.totalorder %s22_s17, 4   ;;  %s1767_s16 = sld [smem:[#allocation16_spill]] }
 0x598   : > { %s1768_s12 = smov %s1387_s13  ;;  %s1769_s13 = smov %s1391_s14 }
 0x599   : > { %s1770_s14 = smov %s1496_s26  ;;  %21 = sbr.rel (!%p19_p13) target bundleno = 10 (0xa), region = 115 }
 0x59e   :  { %935 = vsyncpa [#allocation6], 1 }
 0x59f   :  { %937 = vsyncpa [#allocation6 + $0x1], 1 }
 0x5a0   :  { %938 = vsyncpa [#allocation9], 1 }
 0x5a1   :  { %940 = vsyncpa [#allocation9 + $0x1], 1 }
 0x5a2   :  { %941 = vsyncpa [#allocation7], 1 }
 0x5a3   :  { %943 = vsyncpa [#allocation7 + $0x1], 1 }

</bundles_post_ra>
